<compile_context>
chip_gen: v7x
topology: tpu7x:2x2x1
jax: 0.10.0
libtpu: 0.0.40
codegen_flags: <defaults>
</compile_context>

<pallas_src>
import jax
import jax.numpy as jnp
from jax import lax
from jax.experimental import pallas as pl
from jax.experimental.pallas import tpu as pltpu


def _round_up(x, m):
    return (x + m - 1) // m * m


def _mlp_kernel(x_ref, w1t_ref, b1_ref, w2_ref, b2_ref, o_ref):
    # x_ref:   (TB, In)  bf16   -- batch tile (pipelined across the grid)
    # w1t_ref: (H,  In)  bf16   -- W1^T, resident
    # b1_ref:  (H,  1)   f32    -- resident
    # w2_ref:  (H,  1)   f32    -- fc2 weight column, resident
    # b2_ref:  (1,  1)   f32    -- resident
    # o_ref:   (1,  TB)  f32    -- lane-dense output slab
    #
    # fc1 in transposed orientation: hT = W1 @ x^T -> (H, TB), f32 accumulate (MXU).
    hT = lax.dot_general(
        w1t_ref[...], x_ref[...],
        dimension_numbers=(((1,), (1,)), ((), ())),
        preferred_element_type=jnp.float32,
    )
    # bias + ReLU on the VPU, kept in f32.
    hT = jnp.maximum(hT + b1_ref[...], 0.0)
    # fc2 with out_features=1: VPU multiply + sublane (XLU) reduction; result is
    # already lane-dense (1, TB).
    logits = jnp.sum(hT * w2_ref[...], axis=0, keepdims=True) + b2_ref[...]
    # Sigmoid: exp on the EUP, approximate reciprocal also on the EUP.
    o_ref[...] = pl.reciprocal(1.0 + jnp.exp(-logits), approx=True).astype(o_ref.dtype)


def neural_ner_forward(x, w1, b1, w2, b2, *, block_b=512, mxu_dtype=jnp.bfloat16):
    """Fused fc1 -> ReLU -> fc2 -> sigmoid.

    x: (B, In) f32; w1: (In, H); b1: (H,); w2: (H, 1); b2: (1,).  Returns (B, 1) f32.
    (w1/w2 are stored "math-style": y = x @ w1 + b1, i.e. w1 = W1_pytorch.T)
    """
    B, In = x.shape
    In_w, H = w1.shape
    assert In_w == In
    O = w2.shape[1]
    assert O == 1, "kernel is specialised for a single sigmoid output unit"

    # ---- wrapper-side layout prep (one-off, tiny) ----
    In_pad = max(_round_up(In, 8), 8)                 # 30 -> 32: clean lane layout
    H_pad = max(_round_up(H, 8), 8)                   # sublane-aligned hidden dim
    TB = min(block_b, _round_up(max(B, 1), 128))      # batch tile, multiple of 128
    TB = _round_up(TB, 128)
    B_pad = _round_up(max(B, 1), TB)
    G = B_pad // TB

    x_p = jnp.zeros((B_pad, In_pad), mxu_dtype).at[:B, :In].set(x.astype(mxu_dtype))
    w1t = jnp.zeros((H_pad, In_pad), mxu_dtype).at[:H, :In].set(w1.T.astype(mxu_dtype))
    b1c = jnp.zeros((H_pad, 1), jnp.float32).at[:H, 0].set(b1.astype(jnp.float32))
    w2c = jnp.zeros((H_pad, 1), jnp.float32).at[:H, 0].set(w2[:, 0].astype(jnp.float32))
    b2c = b2.reshape(1, 1).astype(jnp.float32)

    out_row = pl.pallas_call(
        _mlp_kernel,
        out_shape=jax.ShapeDtypeStruct((1, B_pad), jnp.float32),
        grid=(G,),
        in_specs=[
            pl.BlockSpec((TB, In_pad), lambda i: (i, 0)),    # x tile (pipelined)
            pl.BlockSpec((H_pad, In_pad), lambda i: (0, 0)),  # W1^T   (resident)
            pl.BlockSpec((H_pad, 1), lambda i: (0, 0)),       # b1     (resident)
            pl.BlockSpec((H_pad, 1), lambda i: (0, 0)),       # w2 col (resident)
            pl.BlockSpec((1, 1), lambda i: (0, 0)),           # b2     (resident)
        ],
        out_specs=pl.BlockSpec((1, TB), lambda i: (0, i)),    # lane-dense out slab
        compiler_params=pltpu.CompilerParams(
            dimension_semantics=("parallel",),                # shard batch tiles across TCs
            vmem_limit_bytes=32 * 1024 * 1024,                # safe on v5e/v6e/v7x
        ),
    )(x_p, w1t, b1c, w2c, b2c)

    return out_row[0, :B].reshape(B, 1)


if __name__ == "__main__":
    # Small shapes consistent with the module: 30 breast-cancer features, H=256.
    batch = 8
    inputsize = 30
    hiddensize = 256
    outputsize = 1

    key = jax.random.PRNGKey(0)
    kx, kw1, kb1, kw2, kb2 = jax.random.split(key, 5)

    x = jax.random.normal(kx, (batch, inputsize), dtype=jnp.float32)

    # Deterministic PyTorch-Linear-style uniform init.
    bound1 = 1.0 / float(jnp.sqrt(inputsize))
    w1 = jax.random.uniform(kw1, (inputsize, hiddensize), jnp.float32, -bound1, bound1)
    b1 = jax.random.uniform(kb1, (hiddensize,), jnp.float32, -bound1, bound1)
    bound2 = 1.0 / float(jnp.sqrt(hiddensize))
    w2 = jax.random.uniform(kw2, (hiddensize, outputsize), jnp.float32, -bound2, bound2)
    b2 = jax.random.uniform(kb2, (outputsize,), jnp.float32, -bound2, bound2)

    out = neural_ner_forward(x, w1, b1, w2, b2)
    out = jax.block_until_ready(out)

    # Pure-JAX f32 reference (bf16 MXU operands + approx reciprocal loosen tolerance).
    ref = jax.nn.sigmoid(jnp.maximum(x @ w1 + b1, 0.0) @ w2 + b2)
    assert out.shape == (batch, outputsize)
    assert jnp.allclose(out, ref, atol=1e-2, rtol=0.0), float(jnp.max(jnp.abs(out - ref)))

    print("KERNEL_OK")
</pallas_src>

<mosaic_0001>
module attributes {stable_mosaic.version = 11 : i64} {
  func.func @_mlp_kernel(%arg0: i32, %arg1: memref<128x32xbf16, #tpu.memory_space<vmem>>, %arg2: memref<256x32xbf16, #tpu.memory_space<vmem>>, %arg3: memref<256x1xf32, #tpu.memory_space<vmem>>, %arg4: memref<256x1xf32, #tpu.memory_space<vmem>>, %arg5: memref<1x1xf32, #tpu.memory_space<vmem>>, %arg6: memref<1x128xf32, #tpu.memory_space<vmem>>) attributes {dimension_semantics = [#tpu.dimension_semantics<parallel>], iteration_bounds = array<i64: 1>, scalar_prefetch = 0 : i64, scratch_operands = 0 : i64, tpu.core_type = #tpu.core_type<tc>, window_params = [{transform_indices = @transform_0, window_bounds = array<i64: 128, 32>}, {pipeline_mode = #tpu.pipeline_mode<synchronous>, transform_indices = @transform_1, window_bounds = array<i64: 256, 32>}, {pipeline_mode = #tpu.pipeline_mode<synchronous>, transform_indices = @transform_2, window_bounds = array<i64: 256, 1>}, {pipeline_mode = #tpu.pipeline_mode<synchronous>, transform_indices = @transform_3, window_bounds = array<i64: 256, 1>}, {pipeline_mode = #tpu.pipeline_mode<synchronous>, transform_indices = @transform_4, window_bounds = array<i64: 1, 1>}, {transform_indices = @transform_5, window_bounds = array<i64: 1, 128>}]} {
    %c0 = arith.constant 0 : index
    %c0_0 = arith.constant 0 : index
    %0 = vector.load %arg2[%c0, %c0_0] : memref<256x32xbf16, #tpu.memory_space<vmem>>, vector<256x32xbf16>
    %c0_1 = arith.constant 0 : index
    %c0_2 = arith.constant 0 : index
    %1 = vector.load %arg1[%c0_1, %c0_2] : memref<128x32xbf16, #tpu.memory_space<vmem>>, vector<128x32xbf16>
    %cst = arith.constant dense<0.000000e+00> : vector<256x128xf32>
    %2 = tpu.matmul %0, %1, %cst {dimension_numbers = #tpu.dot_dimension_numbers<[1], [1], [0], [0], [0, 0, 1, 0], [], []>} : vector<256x32xbf16>, vector<128x32xbf16>, vector<256x128xf32> -> vector<256x128xf32>
    %c0_3 = arith.constant 0 : index
    %c0_4 = arith.constant 0 : index
    %3 = vector.load %arg3[%c0_3, %c0_4] : memref<256x1xf32, #tpu.memory_space<vmem>>, vector<256x1xf32>
    %4 = vector.broadcast %3 : vector<256x1xf32> to vector<256x128xf32>
    %5 = arith.addf %2, %4 : vector<256x128xf32>
    %cst_5 = arith.constant 0.000000e+00 : f32
    %6 = vector.broadcast %cst_5 : f32 to vector<256x128xf32>
    %7 = arith.maximumf %5, %6 : vector<256x128xf32>
    %c0_6 = arith.constant 0 : index
    %c0_7 = arith.constant 0 : index
    %8 = vector.load %arg4[%c0_6, %c0_7] : memref<256x1xf32, #tpu.memory_space<vmem>>, vector<256x1xf32>
    %9 = vector.broadcast %8 : vector<256x1xf32> to vector<256x128xf32>
    %10 = arith.mulf %7, %9 : vector<256x128xf32>
    %cst_8 = arith.constant dense<0.000000e+00> : vector<128xf32>
    %11 = vector.multi_reduction <add>, %10, %cst_8 [0] : vector<256x128xf32> to vector<128xf32>
    %12 = vector.shape_cast %11 : vector<128xf32> to vector<1x128xf32>
    %c0_9 = arith.constant 0 : index
    %c0_10 = arith.constant 0 : index
    %13 = vector.load %arg5[%c0_9, %c0_10] : memref<1x1xf32, #tpu.memory_space<vmem>>, vector<1x1xf32>
    %14 = vector.broadcast %13 : vector<1x1xf32> to vector<1x128xf32>
    %15 = arith.addf %12, %14 : vector<1x128xf32>
    %cst_11 = arith.constant 0.000000e+00 : f32
    %16 = vector.broadcast %cst_11 : f32 to vector<1x128xf32>
    %17 = arith.subf %16, %15 : vector<1x128xf32>
    %18 = math.exp %17 : vector<1x128xf32>
    %cst_12 = arith.constant 1.000000e+00 : f32
    %19 = vector.broadcast %cst_12 : f32 to vector<1x128xf32>
    %20 = arith.addf %19, %18 : vector<1x128xf32>
    %21 = tpu.reciprocal %20 {approx = true} : vector<1x128xf32> -> vector<1x128xf32>
    %c0_13 = arith.constant 0 : index
    %c0_14 = arith.constant 0 : index
    %22 = vector.load %arg6[%c0_13, %c0_14] : memref<1x128xf32, #tpu.memory_space<vmem>>, vector<1x128xf32>
    tpu.vector_store %arg6[%c0_13, %c0_14], %21 {strides = array<i32>} : memref<1x128xf32, #tpu.memory_space<vmem>>, vector<1x128xf32>,
    return
  }
  func.func @transform_0(%arg0: i32) -> (i32, i32) {
    %c0_i32 = arith.constant 0 : i32
    %c0_i32_0 = arith.constant 0 : i32
    return %arg0, %c0_i32 : i32, i32
  }
  func.func @transform_1(%arg0: i32) -> (i32, i32) {
    %c0_i32 = arith.constant 0 : i32
    %c0_i32_0 = arith.constant 0 : i32
    %c0_i32_1 = arith.constant 0 : i32
    return %c0_i32, %c0_i32_0 : i32, i32
  }
  func.func @transform_2(%arg0: i32) -> (i32, i32) {
    %c0_i32 = arith.constant 0 : i32
    %c0_i32_0 = arith.constant 0 : i32
    %c0_i32_1 = arith.constant 0 : i32
    return %c0_i32, %c0_i32_0 : i32, i32
  }
  func.func @transform_3(%arg0: i32) -> (i32, i32) {
    %c0_i32 = arith.constant 0 : i32
    %c0_i32_0 = arith.constant 0 : i32
    %c0_i32_1 = arith.constant 0 : i32
    return %c0_i32, %c0_i32_0 : i32, i32
  }
  func.func @transform_4(%arg0: i32) -> (i32, i32) {
    %c0_i32 = arith.constant 0 : i32
    %c0_i32_0 = arith.constant 0 : i32
    %c0_i32_1 = arith.constant 0 : i32
    return %c0_i32, %c0_i32_0 : i32, i32
  }
  func.func @transform_5(%arg0: i32) -> (i32, i32) {
    %c0_i32 = arith.constant 0 : i32
    %c0_i32_0 = arith.constant 0 : i32
    return %c0_i32, %arg0 : i32, i32
  }
}

</mosaic_0001>

<bundles_post_ra>
// kernel: tpu_custom_call.1
= control target key start
LH: loop header
LB: loop body
LE: loop exit
PB: predicated region body
PF: predicated region fallthrough
CT: control target
= control target key end

     0   :  { %s1664_s0 = inlined_call_operand.vmem [shape: bf16[128,32], index: 0, kind: input, shape index: {}]   ;;  %s1665_s1 = inlined_call_operand.vmem [shape: bf16[256,32], index: 1, kind: input, shape index: {}]   ;;  %s1666_s2 = inlined_call_operand.vmem [shape: f32[256,1], index: 2, kind: input, shape index: {}]   ;;  %s1667_s3 = inlined_call_operand.vmem [shape: f32[256,1], index: 3, kind: input, shape index: {}]   ;;  %s1668_s4 = inlined_call_operand.<no memory space> [shape: f32[1,1], index: 4, kind: input, shape index: {}]   ;;  %s1669_s5 = inlined_call_operand.hbm [shape: f32[1,128], index: 5, kind: output, shape index: {}]  }
   0x1   :  { %v10_v0 = vstv %s1668_s4 }
   0x2   :  { %11 = vst [vmem:[#allocation2] sm:$0x1] %v10_v0 }
   0x3   :  { %v74_v1 = vld [vmem:[%s1666_s2 + $0x10] sm:$0xff]  ;;  %v72_v2 = vld [vmem:[%s1666_s2] sm:$0xff]  ;;  %vm384_vm0 = vcmask 261120   ;;  %v1142_v3 = vmov 0   ;;  %v75_v5 = vld [vmem:[%s1666_s2 + $0x18] sm:$0xff] }
   0x4   :  { %1089 = vset.pattern.permute.xlu1 %v1142_v3  ;;  %1088 = vset.pattern.permute.xlu0 %v1142_v3  ;;  %v1090_v4 = vld [vmem:[%s1664_s0] sm:$0xff]   ;;  %v73_v6 = vld [vmem:[%s1666_s2 + $0x8] sm:$0xff]  ;;  %v1092_v12 = vld [vmem:[%s1664_s0 + $0x10] sm:$0xff]  }
   0x5   :  { %116 = vperm.xlu1 %1089, %v74_v1   ;;  %106 = vperm.xlu0 %1088, %v72_v2   ;;  %v434_v7 = vsel %vm384_vm0, %v1090_v4, 0  ;;  %v1091_v8 = vld [vmem:[%s1664_s0 + $0x8] sm:$0xff]   ;;  %v76_v10 = vld [vmem:[%s1666_s2 + $0x20] sm:$0xff]  ;;  %v79_v13 = vld [vmem:[%s1666_s2 + $0x38] sm:$0xff]  ;;  %v440_v17 = vsel %vm384_vm0, %v1092_v12, 0 }
   0x6   :  { %1070 = vmatprep.subr.msk.bf16.mxu0 %vm384_vm0, %v1090_v4  ;;  %1071 = vmatprep.subr.msk.bf16.mxu1 %vm384_vm0, %v1090_v4  ;;  %v77_v9 = vld [vmem:[%s1666_s2 + $0x28] sm:$0xff]  ;;  %v437_v11 = vsel %vm384_vm0, %v1091_v8, 0  ;;  %v78_v14 = vld [vmem:[%s1666_s2 + $0x30] sm:$0xff]  ;;  %v80_v16 = vld [vmem:[%s1666_s2 + $0x40] sm:$0xff] }
   0x7   :  { %1007 = vmatpush3.bf16.xpose.msra.mxu0 %v434_v7  ;;  %1062 = vmatpush3.bf16.xpose.msra.mxu1 %v434_v7  ;;  %v81_v15 = vld [vmem:[%s1666_s2 + $0x48] sm:$0xff]  ;;  %v1093_v18 = vld [vmem:[%s1664_s0 + $0x18] sm:$0xff]   ;;  %v82_v20 = vld [vmem:[%s1666_s2 + $0x50] sm:$0xff] }
   0x8   :  { %1072 = vmatprep.subr.msk.bf16.mxu0 %vm384_vm0, %v1091_v8  ;;  %1073 = vmatprep.subr.msk.bf16.mxu1 %vm384_vm0, %v1091_v8  ;;  %v83_v19 = vld [vmem:[%s1666_s2 + $0x58] sm:$0xff]  ;;  %v1098_v21 = vld [vmem:[%s1665_s1] sm:$0xff]   ;;  %v85_v23 = vld [vmem:[%s1666_s2 + $0x68] sm:$0xff]  ;;  %v443_v25 = vsel %vm384_vm0, %v1093_v18, 0 }
   0x9   :  { %121 = vperm.xlu1 %1089, %v75_v5   ;;  %111 = vperm.xlu0 %1088, %v73_v6   ;;  %v1099_v22 = vld [vmem:[%s1665_s1 + $0x40] sm:$0xff]   ;;  %v87_v27 = vld [vmem:[%s1666_s2 + $0x78] sm:$0xff]  ;;  %v86_v28 = vld [vmem:[%s1666_s2 + $0x70] sm:$0xff] }
   0xa   :  { %v84_v24 = vld [vmem:[%s1666_s2 + $0x60] sm:$0xff]  ;;  %1022 = vmatprep.mubr.msk.bf16.mxu0 %vm384_vm0, %v1098_v21  ;;  %1038 = vmatprep.mubr.msk.bf16.mxu1 %vm384_vm0, %v1099_v22  ;;  %v89_v29 = vld [vmem:[%s1666_s2 + $0x88] sm:$0xff]  ;;  %v91_v33 = vld [vmem:[%s1666_s2 + $0x98] sm:$0xff] }
   0xb   :  { %v1094_v26 = vld [vmem:[%s1664_s0 + $0x20] sm:$0xff]   ;;  %v1095_v32 = vld [vmem:[%s1664_s0 + $0x28] sm:$0xff]   ;;  %v90_v34 = vld [vmem:[%s1666_s2 + $0x90] sm:$0xff] }
   0xc   :  { %v88_v30 = vld [vmem:[%s1666_s2 + $0x80] sm:$0xff]  ;;  %v446_v31 = vsel %vm384_vm0, %v1094_v26, 0  ;;  %v93_v35 = vld [vmem:[%s1666_s2 + $0xa8] sm:$0xff]  ;;  %v449_v37 = vsel %vm384_vm0, %v1095_v32, 0  ;;  %v1096_v38 = vld [vmem:[%s1664_s0 + $0x30] sm:$0xff]  }
   0xd   :  { %131 = vperm.xlu1 %1089, %v77_v9   ;;  %126 = vperm.xlu0 %1088, %v76_v10   ;;  %v92_v36 = vld [vmem:[%s1666_s2 + $0xa0] sm:$0xff]  ;;  %v651_v39 = vld [vmem:[%s1667_s3 + $0x8] sm:$0xff] }
   0xe   :  { %v650_v40 = vld [vmem:[%s1667_s3] sm:$0xff] }
   0xf   :  { %1009 = vmatpush3.bf16.xpose.msra.mxu0 %v437_v11  ;;  %1063 = vmatpush3.bf16.xpose.msra.mxu1 %v437_v11 }
  0x10   :  { %1074 = vmatprep.subr.msk.bf16.mxu0 %vm384_vm0, %v1092_v12  ;;  %1075 = vmatprep.subr.msk.bf16.mxu1 %vm384_vm0, %v1092_v12 }
  0x11   :  { %141 = vperm.xlu1 %1089, %v79_v13   ;;  %136 = vperm.xlu0 %1088, %v78_v14  }
  0x15   :  { %151 = vperm.xlu1 %1089, %v81_v15   ;;  %146 = vperm.xlu0 %1088, %v80_v16  }
  0x17   :  { %1011 = vmatpush3.bf16.xpose.msra.mxu0 %v440_v17  ;;  %1064 = vmatpush3.bf16.xpose.msra.mxu1 %v440_v17 }
  0x18   :  { %1076 = vmatprep.subr.msk.bf16.mxu0 %vm384_vm0, %v1093_v18  ;;  %1077 = vmatprep.subr.msk.bf16.mxu1 %vm384_vm0, %v1093_v18 }
  0x19   :  { %161 = vperm.xlu1 %1089, %v83_v19   ;;  %156 = vperm.xlu0 %1088, %v82_v20  }
  0x1d   :  { %171 = vperm.xlu1 %1089, %v85_v23   ;;  %166 = vperm.xlu0 %1088, %v84_v24  }
  0x1f   :  { %1013 = vmatpush3.bf16.xpose.msra.mxu0 %v443_v25  ;;  %1065 = vmatpush3.bf16.xpose.msra.mxu1 %v443_v25 }
  0x20   :  { %1078 = vmatprep.subr.msk.bf16.mxu0 %vm384_vm0, %v1094_v26  ;;  %1079 = vmatprep.subr.msk.bf16.mxu1 %vm384_vm0, %v1094_v26 }
  0x21   :  { %181 = vperm.xlu1 %1089, %v87_v27   ;;  %176 = vperm.xlu0 %1088, %v86_v28  }
  0x25   :  { %191 = vperm.xlu1 %1089, %v89_v29   ;;  %186 = vperm.xlu0 %1088, %v88_v30  }
  0x27   :  { %1015 = vmatpush3.bf16.xpose.msra.mxu0 %v446_v31  ;;  %1066 = vmatpush3.bf16.xpose.msra.mxu1 %v446_v31 }
  0x28   :  { %1080 = vmatprep.subr.msk.bf16.mxu0 %vm384_vm0, %v1095_v32  ;;  %1081 = vmatprep.subr.msk.bf16.mxu1 %vm384_vm0, %v1095_v32 }
  0x29   :  { %201 = vperm.xlu1 %1089, %v91_v33   ;;  %196 = vperm.xlu0 %1088, %v90_v34  }
  0x2d   :  { %211 = vperm.xlu1 %1089, %v93_v35   ;;  %206 = vperm.xlu0 %1088, %v92_v36  }
  0x2f   :  { %1017 = vmatpush3.bf16.xpose.msra.mxu0 %v449_v37  ;;  %1067 = vmatpush3.bf16.xpose.msra.mxu1 %v449_v37 }
  0x30   :  { %1082 = vmatprep.subr.msk.bf16.mxu0 %vm384_vm0, %v1096_v38  ;;  %1083 = vmatprep.subr.msk.bf16.mxu1 %vm384_vm0, %v1096_v38 }
  0x31   :  { %12 = vsyncpa [#allocation4], 0  ;;  %689 = vperm.xlu1 %1089, %v651_v39   ;;  %684 = vperm.xlu0 %1088, %v650_v40   ;;  %v653_v41 = vld [vmem:[%s1667_s3 + $0x18] sm:$0xff]  ;;  %v652_v42 = vld [vmem:[%s1667_s3 + $0x10] sm:$0xff]  ;;  %v452_v43 = vsel %vm384_vm0, %v1096_v38, 0 }
  0x32   :  { %v1097_v44 = vld [vmem:[%s1664_s0 + $0x38] sm:$0xff]   ;;  %v655_v45 = vld [vmem:[%s1667_s3 + $0x28] sm:$0xff]  ;;  %v654_v46 = vld [vmem:[%s1667_s3 + $0x20] sm:$0xff] }
  0x33   :  { %v657_v47 = vld [vmem:[%s1667_s3 + $0x38] sm:$0xff]  ;;  %v656_v48 = vld [vmem:[%s1667_s3 + $0x30] sm:$0xff]  ;;  %v455_v49 = vsel %vm384_vm0, %v1097_v44, 0  ;;  %v659_v50 = vld [vmem:[%s1667_s3 + $0x48] sm:$0xff] }
  0x34   :  { %v658_v51 = vld [vmem:[%s1667_s3 + $0x40] sm:$0xff]  ;;  %v661_v52 = vld [vmem:[%s1667_s3 + $0x58] sm:$0xff]  ;;  %v660_v53 = vld [vmem:[%s1667_s3 + $0x50] sm:$0xff] }
  0x35   :  { %699 = vperm.xlu1 %1089, %v653_v41   ;;  %694 = vperm.xlu0 %1088, %v652_v42   ;;  %v1100_v54 = vld [vmem:[%s1665_s1 + $0x8] sm:$0xff]   ;;  %v1102_v56 = vld [vmem:[%s1665_s1 + $0x10] sm:$0xff]   ;;  %v662_v59 = vld [vmem:[%s1667_s3 + $0x60] sm:$0xff] }
  0x36   :  { %v1101_v55 = vld [vmem:[%s1665_s1 + $0x48] sm:$0xff]   ;;  %v1103_v57 = vld [vmem:[%s1665_s1 + $0x50] sm:$0xff]   ;;  %v665_v60 = vld [vmem:[%s1667_s3 + $0x78] sm:$0xff] }
  0x37   :  { %1019 = vmatpush3.bf16.xpose.msra.mxu0 %v452_v43  ;;  %1068 = vmatpush3.bf16.xpose.msra.mxu1 %v452_v43  ;;  %v663_v58 = vld [vmem:[%s1667_s3 + $0x68] sm:$0xff]  ;;  %v664_v61 = vld [vmem:[%s1667_s3 + $0x70] sm:$0xff]  ;;  %v1104_v62 = vld [vmem:[%s1665_s1 + $0x18] sm:$0xff]  }
  0x38   :  { %1084 = vmatprep.subr.msk.bf16.mxu0 %vm384_vm0, %v1097_v44  ;;  %1085 = vmatprep.subr.msk.bf16.mxu1 %vm384_vm0, %v1097_v44  ;;  %v1105_v63 = vld [vmem:[%s1665_s1 + $0x58] sm:$0xff]   ;;  %v1106_v0 = vld [vmem:[%s1665_s1 + $0x20] sm:$0xff]   ;;  %v667_v2 = vld [vmem:[%s1667_s3 + $0x88] sm:$0xff] }
  0x39   :  { %709 = vperm.xlu1 %1089, %v655_v45   ;;  %704 = vperm.xlu0 %1088, %v654_v46   ;;  %v1107_v1 = vld [vmem:[%s1665_s1 + $0x60] sm:$0xff]   ;;  %v669_v4 = vld [vmem:[%s1667_s3 + $0x98] sm:$0xff]  ;;  %v668_v5 = vld [vmem:[%s1667_s3 + $0x90] sm:$0xff] }
  0x3a   :  { %v666_v3 = vld [vmem:[%s1667_s3 + $0x80] sm:$0xff]  ;;  %v1108_v6 = vld [vmem:[%s1665_s1 + $0x28] sm:$0xff]   ;;  %v1110_v8 = vld [vmem:[%s1665_s1 + $0x30] sm:$0xff]  }
  0x3b   :  { %v1109_v7 = vld [vmem:[%s1665_s1 + $0x68] sm:$0xff]   ;;  %v1111_v9 = vld [vmem:[%s1665_s1 + $0x70] sm:$0xff]   ;;  %v670_v10 = vld [vmem:[%s1667_s3 + $0xa0] sm:$0xff] }
  0x3c   :  { %v94_v11 = vld [vmem:[%s1666_s2 + $0xb0] sm:$0xff]  ;;  %v671_v12 = vld [vmem:[%s1667_s3 + $0xa8] sm:$0xff]  ;;  %v95_v13 = vld [vmem:[%s1666_s2 + $0xb8] sm:$0xff] }
  0x3d   :  { %719 = vperm.xlu1 %1089, %v657_v47   ;;  %714 = vperm.xlu0 %1088, %v656_v48   ;;  %v1112_v14 = vld [vmem:[%s1665_s1 + $0x38] sm:$0xff]   ;;  %v672_v16 = vld [vmem:[%s1667_s3 + $0xb0] sm:$0xff]  ;;  %v96_v17 = vld [vmem:[%s1666_s2 + $0xc0] sm:$0xff] }
  0x3e   :  { %v1113_v15 = vld [vmem:[%s1665_s1 + $0x78] sm:$0xff]   ;;  %v97_v19 = vld [vmem:[%s1666_s2 + $0xc8] sm:$0xff]  ;;  %v674_v20 = vld [vmem:[%s1667_s3 + $0xc0] sm:$0xff] }
  0x3f   :  { %1021 = vmatpush3.bf16.xpose.msra.mxu0 %v455_v49  ;;  %1069 = vmatpush3.bf16.xpose.msra.mxu1 %v455_v49  ;;  %v673_v18 = vld [vmem:[%s1667_s3 + $0xb8] sm:$0xff]  ;;  %v98_v21 = vld [vmem:[%s1666_s2 + $0xd0] sm:$0xff]  ;;  %v675_v22 = vld [vmem:[%s1667_s3 + $0xc8] sm:$0xff] }
  0x40   :  { %v99_v23 = vld [vmem:[%s1666_s2 + $0xd8] sm:$0xff]  ;;  %v676_v24 = vld [vmem:[%s1667_s3 + $0xd0] sm:$0xff]  ;;  %v100_v25 = vld [vmem:[%s1666_s2 + $0xe0] sm:$0xff] }
  0x41   :  { %729 = vperm.xlu1 %1089, %v659_v50   ;;  %724 = vperm.xlu0 %1088, %v658_v51   ;;  %v677_v26 = vld [vmem:[%s1667_s3 + $0xd8] sm:$0xff]  ;;  %v101_v27 = vld [vmem:[%s1666_s2 + $0xe8] sm:$0xff]  ;;  %v678_v28 = vld [vmem:[%s1667_s3 + $0xe0] sm:$0xff] }
  0x42   :  { %v102_v29 = vld [vmem:[%s1666_s2 + $0xf0] sm:$0xff]  ;;  %v679_v30 = vld [vmem:[%s1667_s3 + $0xe8] sm:$0xff]  ;;  %v103_v31 = vld [vmem:[%s1666_s2 + $0xf8] sm:$0xff]  ;;  %s1143_s2 = smov [#allocation3]  }
  0x43   :  { %v681_v32 = vld [vmem:[%s1667_s3 + $0xf8] sm:$0xff]  ;;  %v680_v33 = vld [vmem:[%s1667_s3 + $0xf0] sm:$0xff]  ;;  %v911_v34 = vld [vmem:[#allocation2] sm:$0x1]  ;;  %s934_s3 = sshll.u32 %s1143_s2, 4  ;;  %s935_s3 = int_to_ptr.vmem [resolvable:$true] %s934_s3 }
  0x44   :  { %s1118_s8 = scalar_lea.vmem %s935_s3, 16  ;;  %s1122_s9 = scalar_lea.vmem %s935_s3, 32 }
  0x45   :  { %739 = vperm.xlu1 %1089, %v661_v52   ;;  %734 = vperm.xlu0 %1088, %v660_v53   ;;  %p1119_p0 = scmp.ne.s32.totalorder %s935_s3, %s1118_s8  ;;  %p1123_p1 = scmp.lt.s32.totalorder %s935_s3, %s935_s3 }
  0x46   :  { %1023 = vmatmul.mubr.msk.bf16.vlgmr.msra.gmra.mrb[0].mxu0 %vm384_vm0, %v1100_v54  ;;  %1039 = vmatmul.mubr.msk.bf16.vlgmr.msra.gmra.mrb[0].mxu1 %vm384_vm0, %v1101_v55  ;;  %p1124_p2 = scmp.lt.s32.totalorder %s1122_s9, %s1118_s8 }
  0x47   :  { %1026 = vmatprep.mubr.msk.bf16.mxu0 %vm384_vm0, %v1102_v56  ;;  %1042 = vmatprep.mubr.msk.bf16.mxu1 %vm384_vm0, %v1103_v57 }
  0x48   :  { %p1125_p3 = por %p1124_p2, %p1123_p1 }
  0x49   :  { %749 = vperm.xlu1 %1089, %v663_v58   ;;  %744 = vperm.xlu0 %1088, %v662_v59  }
  0x4a   :  { %p1126_p4 = pnand %p1125_p3, %p1119_p0 }
  0x4d   :  { %759 = vperm.xlu1 %1089, %v665_v60   ;;  %754 = vperm.xlu0 %1088, %v664_v61  }
  0x4e   :  { %1027 = vmatmul.mubr.msk.bf16.gmra.mrb[4].mxu0 %vm384_vm0, %v1104_v62  ;;  %1043 = vmatmul.mubr.msk.bf16.gmra.mrb[4].mxu1 %vm384_vm0, %v1105_v63 }
  0x4f   :  { %1030 = vmatprep.mubr.msk.bf16.mxu0 %vm384_vm0, %v1106_v0  ;;  %1046 = vmatprep.mubr.msk.bf16.mxu1 %vm384_vm0, %v1107_v1 }
  0x51   :  { %769 = vperm.xlu1 %1089, %v667_v2   ;;  %764 = vperm.xlu0 %1088, %v666_v3  }
  0x55   :  { %779 = vperm.xlu1 %1089, %v669_v4   ;;  %774 = vperm.xlu0 %1088, %v668_v5  }
  0x56   :  { %1031 = vmatmul.mubr.msk.bf16.gmra.mrb[8].mxu0 %vm384_vm0, %v1108_v6  ;;  %1047 = vmatmul.mubr.msk.bf16.gmra.mrb[8].mxu1 %vm384_vm0, %v1109_v7 }
  0x57   :  { %1034 = vmatprep.mubr.msk.bf16.mxu0 %vm384_vm0, %v1110_v8  ;;  %1050 = vmatprep.mubr.msk.bf16.mxu1 %vm384_vm0, %v1111_v9 }
  0x59   :  { %784 = vperm.xlu1 %1089, %v670_v10   ;;  %216 = vperm.xlu0 %1088, %v94_v11  }
  0x5d   :  { %789 = vperm.xlu1 %1089, %v671_v12   ;;  %221 = vperm.xlu0 %1088, %v95_v13  }
  0x5e   :  { %1035 = vmatmul.mubr.msk.bf16.gmra.mrb[12].mxu0 %vm384_vm0, %v1112_v14  ;;  %1051 = vmatmul.mubr.msk.bf16.gmra.mrb[12].mxu1 %vm384_vm0, %v1113_v15 }
  0x61   :  { %794 = vperm.xlu1 %1089, %v672_v16   ;;  %226 = vperm.xlu0 %1088, %v96_v17  }
  0x65   :  { %799 = vperm.xlu1 %1089, %v673_v18   ;;  %231 = vperm.xlu0 %1088, %v97_v19  }
  0x69   :  { %804 = vperm.xlu1 %1089, %v674_v20   ;;  %236 = vperm.xlu0 %1088, %v98_v21  }
  0x6d   :  { %809 = vperm.xlu1 %1089, %v675_v22   ;;  %241 = vperm.xlu0 %1088, %v99_v23  }
  0x71   :  { %814 = vperm.xlu1 %1089, %v676_v24   ;;  %246 = vperm.xlu0 %1088, %v100_v25  }
  0x75   :  { %819 = vperm.xlu1 %1089, %v677_v26   ;;  %251 = vperm.xlu0 %1088, %v101_v27  }
  0x79   :  { %824 = vperm.xlu1 %1089, %v678_v28   ;;  %256 = vperm.xlu0 %1088, %v102_v29  }
  0x7d   :  { %829 = vperm.xlu1 %1089, %v679_v30   ;;  %261 = vperm.xlu0 %1088, %v103_v31  }
  0x81   :  { %839 = vperm.xlu1 %1089, %v681_v32   ;;  %834 = vperm.xlu0 %1088, %v680_v33  }
  0x84   :  { %v117_v35 = vpop.permute.xlu1 %116  ;;  %v107_v36 = vpop.permute.xlu0 %106 }
  0x85   :  { %914 = vperm.xlu0 %1088, %v911_v34  }
  0x88   :  { %v122_v37 = vpop.permute.xlu1 %121  ;;  %v112_v38 = vpop.permute.xlu0 %111 }
  0x8c   :  { %v1481_v39 = vpop.permute.xlu1 %131  ;;  %v1483_v40 = vpop.permute.xlu0 %126 }
  0x90   :  { %v1485_v41 = vpop.permute.xlu1 %141  ;;  %v1487_v42 = vpop.permute.xlu0 %136 }
  0x94   :  { %v1489_v43 = vpop.permute.xlu1 %151  ;;  %v1491_v44 = vpop.permute.xlu0 %146 }
  0x98   :  { %v1493_v45 = vpop.permute.xlu1 %161  ;;  %v1495_v46 = vpop.permute.xlu0 %156 }
  0x9c   :  { %v1497_v47 = vpop.permute.xlu1 %171  ;;  %v1499_v48 = vpop.permute.xlu0 %166 }
  0xa0   :  { %v1501_v49 = vpop.permute.xlu1 %181  ;;  %v1503_v50 = vpop.permute.xlu0 %176 }
  0xa4   :  { %v1505_v51 = vpop.permute.xlu1 %191  ;;  %v1507_v52 = vpop.permute.xlu0 %186 }
  0xa8   :  { %v1509_v53 = vpop.permute.xlu1 %201  ;;  %v1511_v54 = vpop.permute.xlu0 %196 }
  0xac   :  { %v1513_v55 = vpop.permute.xlu1 %211  ;;  %v1515_v56 = vpop.permute.xlu0 %206 }
  0xb0   :  { %v690_v57 = vpop.permute.xlu1 %689  ;;  %v685_v58 = vpop.permute.xlu0 %684 }
  0xb4   :  { %v700_v59 = vpop.permute.xlu1 %699  ;;  %v695_v60 = vpop.permute.xlu0 %694 }
  0xb8   :  { %v1517_v61 = vpop.permute.xlu1 %709  ;;  %v705_v62 = vpop.permute.xlu0 %704 }
  0xbc   :  { %v1519_v63 = vpop.permute.xlu1 %719  ;;  %v1521_v0 = vpop.permute.xlu0 %714 }
  0xc0   :  { %v1523_v1 = vpop.permute.xlu1 %729  ;;  %v1525_v2 = vpop.permute.xlu0 %724 }
  0xc4   :  { %v1527_v3 = vpop.permute.xlu1 %739  ;;  %v1529_v4 = vpop.permute.xlu0 %734 }
  0xc8   :  { %v1531_v5 = vpop.permute.xlu1 %749  ;;  %v1533_v6 = vpop.permute.xlu0 %744 }
  0xcc   :  { %v1535_v7 = vpop.permute.xlu1 %759  ;;  %v1537_v8 = vpop.permute.xlu0 %754 }
  0xd0   :  { %v1539_v9 = vpop.permute.xlu1 %769  ;;  %v1541_v10 = vpop.permute.xlu0 %764 }
  0xd4   :  { %v1543_v11 = vpop.permute.xlu1 %779  ;;  %v1545_v12 = vpop.permute.xlu0 %774 }
  0xd8   :  { %v1547_v13 = vpop.permute.xlu1 %784  ;;  %v1549_v14 = vpop.permute.xlu0 %216 }
  0xd9   :  { %1670 = vst [vmem:[#allocation6_spill] sm:$0xff] %v1547_v13 }
  0xdc   :  { %v1559_v30 = vpop.permute.xlu1 %789  ;;  %v1561_v31 = vpop.permute.xlu0 %221 }
  0xdd   :  { %1671 = vst [vmem:[#allocation7_spill] sm:$0xff] %v1559_v30 }
 0x119   :  { %v1024_v15 = vpop.f32.mrb[0].mxu0  ;;  %v1551_v16 = vpop.f32.mrb[0].mxu1 }
 0x11a   :  { %v491_v17 = vpop.f32.mrb[1].mxu0  ;;  %v1553_v18 = vpop.f32.mrb[1].mxu1  ;;  %v500_v19 = vadd.f32 %v1024_v15, %v117_v35 }
 0x11b   :  { %v492_v20 = vadd.f32 %v491_v17, %v107_v36  ;;  %v1025_v21 = vpop.f32.mrb[2].mxu0  ;;  %v1555_v22 = vpop.f32.mrb[2].mxu1 }
 0x11c   :  { %v503_v23 = vadd.f32 %v1025_v21, %v122_v37  ;;  %v494_v24 = vpop.f32.mrb[3].mxu0  ;;  %v1557_v25 = vpop.f32.mrb[3].mxu1  ;;  %v620_v28 = vmax.f32 %v500_v19, 0.0 }
 0x11d   :  { %v618_v26 = vmax.f32 %v492_v20, 0.0  ;;  %v495_v27 = vadd.f32 %v494_v24, %v112_v38 }
 0x11e   :  { %v621_v32 = vmax.f32 %v503_v23, 0.0  ;;  %v844_v37 = vmul.f32 %v695_v60, %v620_v28 }
 0x11f   :  { %v619_v29 = vmax.f32 %v495_v27, 0.0  ;;  %v842_v33 = vmul.f32 %v685_v58, %v618_v26 }
 0x120   :  { %v845_v27 = vmul.f32 %v700_v59, %v621_v32 }
 0x121   :  { %v843_v34 = vmul.f32 %v690_v57, %v619_v29  ;;  %v1028_v35 = vpop.f32.mrb[4].mxu0  ;;  %v1563_v36 = vpop.f32.mrb[4].mxu1 }
 0x122   :  { %v507_v15 = vpop.f32.mrb[5].mxu0  ;;  %v1565_v17 = vpop.f32.mrb[5].mxu1  ;;  %v516_v20 = vadd.f32 %v1028_v35, %v1487_v42 }
 0x123   :  { %v874_v21 = vadd.f32 %v843_v34, %v842_v33  ;;  %v508_v38 = vadd.f32 %v507_v15, %v1483_v40  ;;  %v1029_v19 = vpop.f32.mrb[6].mxu0  ;;  %v1569_v24 = vpop.f32.mrb[6].mxu1 }
 0x124   :  { %v510_v30 = vpop.f32.mrb[7].mxu0  ;;  %v1571_v23 = vpop.f32.mrb[7].mxu1  ;;  %v519_v26 = vadd.f32 %v1029_v19, %v1485_v41  ;;  %v624_v13 = vmax.f32 %v516_v20, 0.0 }
 0x125   :  { %v875_v57 = vadd.f32 %v874_v21, %v844_v37  ;;  %v622_v58 = vmax.f32 %v508_v38, 0.0  ;;  %v511_v29 = vadd.f32 %v510_v30, %v1481_v39  ;;  %v1575_v42 = vpop.permute.xlu1 %794  ;;  %v1577_v40 = vpop.permute.xlu0 %226 }
 0x126   :  { %v625_v35 = vmax.f32 %v519_v26, 0.0  ;;  %v848_v39 = vmul.f32 %v1521_v0, %v624_v13 }
 0x127   :  { %v846_v60 = vmul.f32 %v705_v62, %v622_v58  ;;  %v876_v28 = vadd.f32 %v875_v57, %v845_v27  ;;  %v623_v33 = vmax.f32 %v511_v29, 0.0 }
 0x129   :  { %v877_v34 = vadd.f32 %v876_v28, %v846_v60  ;;  %v847_v59 = vmul.f32 %v1517_v61, %v623_v33  ;;  %v1032_v32 = vpop.f32.mrb[8].mxu0  ;;  %v1580_v15 = vpop.f32.mrb[8].mxu1  ;;  %v849_v61 = vmul.f32 %v1519_v63, %v625_v35 }
 0x12a   :  { %v523_v37 = vpop.f32.mrb[9].mxu0  ;;  %v1582_v21 = vpop.f32.mrb[9].mxu1  ;;  %v532_v38 = vadd.f32 %v1032_v32, %v1495_v46 }
 0x12b   :  { %v878_v41 = vadd.f32 %v877_v34, %v847_v59  ;;  %v524_v62 = vadd.f32 %v523_v37, %v1491_v44  ;;  %v1033_v30 = vpop.f32.mrb[10].mxu0  ;;  %v1586_v20 = vpop.f32.mrb[10].mxu1 }
 0x12c   :  { %v526_v19 = vpop.f32.mrb[11].mxu0  ;;  %v1589_v27 = vpop.f32.mrb[11].mxu1  ;;  %v535_v26 = vadd.f32 %v1033_v30, %v1493_v45  ;;  %v628_v28 = vmax.f32 %v532_v38, 0.0 }
 0x12d   :  { %v879_v57 = vadd.f32 %v878_v41, %v848_v39  ;;  %v626_v58 = vmax.f32 %v524_v62, 0.0  ;;  %v527_v29 = vadd.f32 %v526_v19, %v1489_v43  ;;  %v1595_v44 = vpop.permute.xlu1 %799  ;;  %v1597_v60 = vpop.permute.xlu0 %231 }
 0x12e   :  { %v629_v63 = vmax.f32 %v535_v26, 0.0  ;;  %v852_v39 = vmul.f32 %v1529_v4, %v628_v28  ;;  %v556_v4 = vadd.f32 %v1553_v18, %v1507_v52  ;;  %v559_v28 = vadd.f32 %v1557_v25, %v1505_v51 }
 0x12f   :  { %v850_v0 = vmul.f32 %v1525_v2, %v626_v58  ;;  %v880_v13 = vadd.f32 %v879_v57, %v849_v61  ;;  %v627_v46 = vmax.f32 %v527_v29, 0.0  ;;  %v567_v52 = vadd.f32 %v1555_v22, %v1509_v53 }
 0x130   :  { %v853_v61 = vmul.f32 %v1527_v3, %v629_v63  ;;  %v635_v18 = vmax.f32 %v559_v28, 0.0 }
 0x131   :  { %v881_v33 = vadd.f32 %v880_v13, %v850_v0  ;;  %v1036_v34 = vpop.f32.mrb[12].mxu0  ;;  %v1599_v59 = vpop.f32.mrb[12].mxu1  ;;  %v851_v35 = vmul.f32 %v1523_v1, %v627_v46 }
 0x132   :  { %v539_v32 = vpop.f32.mrb[13].mxu0  ;;  %v1602_v45 = vpop.f32.mrb[13].mxu1  ;;  %v548_v62 = vadd.f32 %v1036_v34, %v1503_v50 }
 0x133   :  { %v540_v43 = vadd.f32 %v539_v32, %v1499_v48  ;;  %v1037_v2 = vpop.f32.mrb[14].mxu0  ;;  %v1605_v37 = vpop.f32.mrb[14].mxu1  ;;  %v882_v41 = vadd.f32 %v881_v33, %v851_v35 }
 0x134   :  { %v542_v30 = vpop.f32.mrb[15].mxu0  ;;  %v1609_v38 = vpop.f32.mrb[15].mxu1  ;;  %v551_v57 = vadd.f32 %v1037_v2, %v1501_v49  ;;  %v632_v29 = vmax.f32 %v548_v62, 0.0  ;;  %v634_v49 = vmax.f32 %v556_v4, 0.0  ;;  %v575_v2 = vadd.f32 %v1571_v23, %v1513_v55 }
 0x135   :  { %v630_v19 = vmax.f32 %v540_v43, 0.0  ;;  %v883_v1 = vadd.f32 %v882_v41, %v852_v39  ;;  %v543_v58 = vadd.f32 %v542_v30, %v1497_v47  ;;  %v237_v48 = vpop.permute.xlu0 %236  ;;  %v805_v13 = vpop.permute.xlu1 %804  ;;  %v564_v47 = vadd.f32 %v1551_v16, %v1511_v54 }
 0x136   :  { %v633_v3 = vmax.f32 %v551_v57, 0.0  ;;  %v858_v43 = vmul.f32 %v1541_v10, %v634_v49  ;;  %v637_v16 = vmax.f32 %v567_v52, 0.0  ;;  %v588_v23 = vadd.f32 %v1582_v21, %v1577_v40 }
 0x137   :  { %v854_v26 = vmul.f32 %v1533_v6, %v630_v19  ;;  %v884_v0 = vadd.f32 %v883_v1, %v853_v61  ;;  %v631_v50 = vmax.f32 %v543_v58, 0.0  ;;  %v856_v6 = vmul.f32 %v1537_v8, %v632_v29  ;;  %v1672_v61 = vld [vmem:[#allocation6_spill] sm:$0xff] }
 0x138   :  { %v857_v35 = vmul.f32 %v1535_v7, %v633_v3  ;;  %v636_v25 = vmax.f32 %v564_v47, 0.0  ;;  %v859_v8 = vmul.f32 %v1539_v9, %v635_v18  ;;  %v580_v7 = vadd.f32 %v1563_v36, %v1549_v14  ;;  %v1673_v14 = vld [vmem:[#allocation7_spill] sm:$0xff] }
 0x139   :  { %v885_v46 = vadd.f32 %v884_v0, %v854_v26  ;;  %v855_v33 = vmul.f32 %v1531_v5, %v631_v50  ;;  %v242_v63 = vpop.permute.xlu0 %241  ;;  %v810_v51 = vpop.permute.xlu1 %809  ;;  %v572_v5 = vadd.f32 %v1565_v17, %v1515_v56  ;;  %v861_v30 = vmul.f32 %v1543_v11, %v637_v16 }
 0x13a   :  { %v860_v22 = vmul.f32 %v1545_v12, %v636_v25  ;;  %v583_v56 = vadd.f32 %v1569_v24, %v1561_v31  ;;  %v639_v17 = vmax.f32 %v575_v2, 0.0  ;;  %v640_v19 = vmax.f32 %v580_v7, 0.0 }
 0x13b   :  { %v886_v34 = vadd.f32 %v885_v46, %v855_v33  ;;  %v638_v41 = vmax.f32 %v572_v5, 0.0  ;;  %v591_v58 = vadd.f32 %v1589_v27, %v1597_v60  ;;  %v596_v24 = vadd.f32 %v1580_v15, %v237_v48 }
 0x13c   :  { %v641_v57 = vmax.f32 %v583_v56, 0.0  ;;  %v863_v36 = vmul.f32 %v1673_v14, %v639_v17  ;;  %v864_v31 = vmul.f32 %v1575_v42, %v640_v19  ;;  %v642_v4 = vmax.f32 %v588_v23, 0.0 }
 0x13d   :  { %v887_v32 = vadd.f32 %v886_v34, %v856_v6  ;;  %v247_v53 = vpop.permute.xlu0 %246  ;;  %v815_v10 = vpop.permute.xlu1 %814  ;;  %v862_v55 = vmul.f32 %v1672_v61, %v638_v41  ;;  %v599_v40 = vadd.f32 %v1586_v20, %v242_v63  ;;  %v643_v21 = vmax.f32 %v591_v58, 0.0 }
 0x13e   :  { %v865_v0 = vmul.f32 %v1595_v44, %v641_v57  ;;  %v644_v46 = vmax.f32 %v596_v24, 0.0  ;;  %v866_v3 = vmul.f32 %v805_v13, %v642_v4  ;;  %v604_v33 = vadd.f32 %v1602_v45, %v247_v53 }
 0x13f   :  { %v888_v54 = vadd.f32 %v887_v32, %v857_v35  ;;  %v645_v47 = vmax.f32 %v599_v40, 0.0  ;;  %v867_v49 = vmul.f32 %v810_v51, %v643_v21 }
 0x140   :  { %v868_v48 = vmul.f32 %v815_v10, %v644_v46  ;;  %v646_v44 = vmax.f32 %v604_v33, 0.0 }
 0x141   :  { %v889_v39 = vadd.f32 %v888_v54, %v858_v43  ;;  %v252_v1 = vpop.permute.xlu0 %251  ;;  %v820_v26 = vpop.permute.xlu1 %819 }
 0x142   :  { %v607_v42 = vadd.f32 %v1609_v38, %v252_v1  ;;  %v869_v63 = vmul.f32 %v820_v26, %v645_v47 }
 0x143   :  { %v890_v62 = vadd.f32 %v889_v39, %v859_v8  ;;  %v917_v39 = vlaneseq }
 0x144   :  { %v647_v18 = vmax.f32 %v607_v42, 0.0 }
 0x145   :  { %v891_v9 = vadd.f32 %v890_v62, %v860_v22  ;;  %v257_v28 = vpop.permute.xlu0 %256  ;;  %v825_v60 = vpop.permute.xlu1 %824  ;;  %v918_v7 = vshrl.u32 %v917_v39, 7 }
 0x146   :  { %v612_v6 = vadd.f32 %v1599_v59, %v257_v28  ;;  %v870_v32 = vmul.f32 %v825_v60, %v646_v44 }
 0x147   :  { %v892_v12 = vadd.f32 %v891_v9, %v861_v30  ;;  %v919_v62 = vsub.s32 0, %v918_v7 }
 0x148   :  { %v648_v45 = vmax.f32 %v612_v6, 0.0 }
 0x149   :  { %v893_v11 = vadd.f32 %v892_v12, %v862_v55  ;;  %v262_v20 = vpop.permute.xlu0 %261  ;;  %v830_v35 = vpop.permute.xlu1 %829 }
 0x14a   :  { %v615_v52 = vadd.f32 %v1605_v37, %v262_v20  ;;  %v871_v51 = vmul.f32 %v830_v35, %v647_v18 }
 0x14b   :  { %v894_v29 = vadd.f32 %v893_v11, %v863_v36 }
 0x14c   :  { %v649_v43 = vmax.f32 %v615_v52, 0.0 }
 0x14d   :  { %v895_v50 = vadd.f32 %v894_v29, %v864_v31  ;;  %v835_v38 = vpop.permute.xlu0 %834  ;;  %v840_v8 = vpop.permute.xlu1 %839 }
 0x14e   :  { %v872_v54 = vmul.f32 %v835_v38, %v648_v45  ;;  %v873_v59 = vmul.f32 %v840_v8, %v649_v43 }
 0x14f   :  { %v896_v27 = vadd.f32 %v895_v50, %v865_v0 }
 0x151   :  { %v897_v15 = vadd.f32 %v896_v27, %v866_v3  ;;  %v915_v30 = vpop.permute.xlu0 %914 }
 0x152   :  { %v920_v17 = vrot.slane %v915_v30, %v919_v62 }
 0x153   :  { %v898_v34 = vadd.f32 %v897_v15, %v867_v49 }
 0x155   :  { %v899_v13 = vadd.f32 %v898_v34, %v868_v48 }
 0x157   :  { %v900_v25 = vadd.f32 %v899_v13, %v869_v63 }
 0x159   :  { %v901_v5 = vadd.f32 %v900_v25, %v870_v32 }
 0x15b   :  { %v902_v16 = vadd.f32 %v901_v5, %v871_v51 }
 0x15d   :  { %v903_v2 = vadd.f32 %v902_v16, %v872_v54 }
 0x15f   :  { %v904_v53 = vadd.f32 %v903_v2, %v873_v59 }
 0x161   :  { %v905_v22 = vrot.slane %v904_v53, 4 }
 0x163   :  { %v906_v37 = vadd.f32 %v905_v22, %v904_v53 }
 0x165   :  { %v907_v41 = vrot.slane %v906_v37, 2 }
 0x167   :  { %v908_v10 = vadd.f32 %v907_v41, %v906_v37 }
 0x169   :  { %v909_v56 = vrot.slane %v908_v10, 1 }
 0x16b   :  { %v910_v9 = vadd.f32 %v909_v56, %v908_v10 }
 0x16d   :  { %v921_v19 = vadd.f32 %v920_v17, %v910_v9 }
 0x16f   :  { %v922_v61 = vsub.f32 0.0, %v921_v19 }
 0x171   :  { %v923_v55 = vmul.f32 1.442695, %v922_v61 }
 0x173   :  { %1114 = vpow2.f32 %v923_v55 }
 0x17d   :  { %v1115_v23 = vpop.eup %1114 }
 0x17e   :  { %v925_v12 = vadd.f32 1.0, %v1115_v23 }
 0x180   :  { %1116 = vrcp.f32 %v925_v12 }
 0x18a   :  { %v1117_v1 = vpop.eup %1116 }
 0x18b   :  { %927 = vst [vmem:[#allocation3] sm:$0x1] %v1117_v1 }
 0x18c   :  { %1129 = shalt.err (!%p1126_p4)
}
 0x18d   :  { %s1130_s12 = scalar_lea.hbm %s1669_s5, 16 }
 0x18e   :  { %p1131_p5 = scmp.ne.s32.totalorder %s1669_s5, %s1130_s12  ;;  %p1134_p6 = scmp.lt.u32.totalorder %s1130_s12, %s1669_s5 }
 0x190   :  { %p1136_p7 = pnand %p1134_p6, %p1131_p5 }
 0x192   :  { %1139 = shalt.err (!%p1136_p7)
}
 0x193   :  { %937 = dma.vmem_to_hbm [thread:$0]  %s935_s3, 16, %s1669_s5, [#allocation4]  }
 0x194   :  { %1140 = dma.done.wait [#allocation4], 16  }
 0x195   :  { %1141 = vsyncadd [#allocation4], 4294967280 }
 0x196   :  { %941 = vsyncpa [#allocation4], 1 }

</bundles_post_ra>
